<compile_context>
chip_gen: v7x
topology: tpu7x:2x2x1
jax: 0.10.0
libtpu: 0.0.40
codegen_flags: <defaults>
</compile_context>

<pallas_src>
import jax
import jax.numpy as jnp
from jax.experimental import pallas as pl
from jax.experimental.pallas import tpu as pltpu

_LANE = 128


def _gdl_partials_kernel(lg_ref, tg_ref, inter_ref, tsum_ref, lsum_ref):
    # Grid: (class, batch, row_chunk).  For a fixed class the three output
    # blocks stay resident in VMEM across the (batch, row_chunk) sub-loop and
    # act as per-class accumulators (initialized on the first sub-step).
    n = pl.program_id(1)
    r = pl.program_id(2)

    @pl.when((n == 0) & (r == 0))
    def _():
        inter_ref[...] = jnp.zeros_like(inter_ref)
        tsum_ref[...] = jnp.zeros_like(tsum_ref)
        lsum_ref[...] = jnp.zeros_like(lsum_ref)

    lg = lg_ref[0, 0].astype(jnp.float32)  # (TR, 128)
    tg = tg_ref[0, 0].astype(jnp.float32)  # (TR, 128)

    # Per-lane (sublane-axis) partial reductions; the expensive cross-lane
    # reduce is deferred to the tiny JAX epilogue outside the hot loop.
    inter_ref[...] += jnp.sum(lg * tg, axis=0, keepdims=True).reshape(1, 1, _LANE)
    tsum_ref[...] += jnp.sum(tg, axis=0, keepdims=True).reshape(1, 1, _LANE)
    lsum_ref[...] += jnp.sum(lg, axis=0, keepdims=True).reshape(1, 1, _LANE)


def generalized_dice_loss(logits, targets, *, row_tile=512):
    """logits, targets: (N, C, D, H, W). Returns the scalar loss (float32)."""
    N, C, D, H, W = logits.shape
    assert targets.shape == logits.shape

    M = D * H * W
    R = pl.cdiv(M, _LANE)    # rows once the spatial dims are lane-packed
    TR = min(row_tile, R)    # rows per grid step (<=512: fits all VMEM budgets)
    CH = pl.cdiv(R, TR)      # row chunks per (class, batch) slab
    Mp = CH * TR * _LANE     # padded flat spatial size

    # Trailing-dim reshapes only (free); zero-pad the flat spatial axis iff it
    # is not a multiple of the tile.  Zero padding is benign for all sums.
    lg = logits.reshape(N, C, M)
    tg = targets.reshape(N, C, M)
    if Mp != M:
        lg = jnp.pad(lg, ((0, 0), (0, 0), (0, Mp - M)))
        tg = jnp.pad(tg, ((0, 0), (0, 0), (0, Mp - M)))
    lg = lg.reshape(N, C, CH * TR, _LANE)
    tg = tg.reshape(N, C, CH * TR, _LANE)

    in_blk = pl.BlockSpec((1, 1, TR, _LANE), lambda c, n, r: (n, c, r, 0))
    out_blk = pl.BlockSpec((1, 1, _LANE), lambda c, n, r: (c, 0, 0))
    out_sds = jax.ShapeDtypeStruct((C, 1, _LANE), jnp.float32)

    inter_p, tsum_p, lsum_p = pl.pallas_call(
        _gdl_partials_kernel,
        out_shape=(out_sds, out_sds, out_sds),
        grid_spec=pltpu.PrefetchScalarGridSpec(
            num_scalar_prefetch=0,
            grid=(C, N, CH),
            in_specs=[in_blk, in_blk],
            out_specs=(out_blk, out_blk, out_blk),
        ),
        compiler_params=pltpu.CompilerParams(
            # Class axis parallel (independent per-class outputs -> megacore
            # split on v7x); batch / row-chunk axes accumulate sequentially
            # into the resident output blocks.
            dimension_semantics=("parallel", "arbitrary", "arbitrary"),
        ),
    )(lg, tg)

    # Tiny epilogue in plain JAX: cross-lane reduce + generalized-dice math.
    smooth = jnp.float32(1e-10)
    inter_c = jnp.sum(inter_p, axis=(1, 2))  # (C,)
    tsum_c = jnp.sum(tsum_p, axis=(1, 2))    # (C,)  = sum of targets per class
    lsum_c = jnp.sum(lsum_p, axis=(1, 2))    # (C,)  = sum of logits per class

    w = 1.0 / (tsum_c * tsum_c + smooth)
    inter = w * inter_c
    union = w * (tsum_c + lsum_c)
    return 1.0 - jnp.mean(2.0 * (inter + smooth) / (union + smooth))


def _gdl_ref(logits, targets):
    smooth = 1e-10
    lg = logits.astype(jnp.float32)
    tg = targets.astype(jnp.float32)
    s_t = jnp.sum(tg, axis=(0, 2, 3, 4))
    w = 1.0 / (s_t ** 2 + smooth)
    inter = w * jnp.sum(tg * lg, axis=(0, 2, 3, 4))
    union = w * jnp.sum(tg + lg, axis=(0, 2, 3, 4))
    return 1.0 - jnp.mean(2.0 * (inter + smooth) / (union + smooth))


if __name__ == "__main__":
    key = jax.random.PRNGKey(0)
    k1, k2 = jax.random.split(key)

    # Small 5-D shapes consistent with the module: (N, C, D, H, W)
    N, C, D, H, W = 2, 4, 4, 8, 16
    logits = jax.nn.softmax(
        jax.random.normal(k1, (N, C, D, H, W), jnp.float32), axis=1
    )
    tidx = jax.random.randint(k2, (N, D, H, W), 0, C)
    targets = jax.nn.one_hot(tidx, C, axis=1, dtype=jnp.float32)

    result = generalized_dice_loss(logits, targets)
    jax.block_until_ready(result)

    ref = _gdl_ref(logits, targets)
    assert jnp.allclose(result, ref, rtol=1e-5, atol=1e-5), (result, ref)

    print("KERNEL_OK")
</pallas_src>

<mosaic_0001>
module attributes {stable_mosaic.version = 11 : i64} {
  func.func @_gdl_partials_kernel(%arg0: i32, %arg1: i32, %arg2: i32, %arg3: memref<1x1x4x128xf32, #tpu.memory_space<vmem>>, %arg4: memref<1x1x4x128xf32, #tpu.memory_space<vmem>>, %arg5: memref<1x1x128xf32, #tpu.memory_space<vmem>>, %arg6: memref<1x1x128xf32, #tpu.memory_space<vmem>>, %arg7: memref<1x1x128xf32, #tpu.memory_space<vmem>>) attributes {dimension_semantics = [#tpu.dimension_semantics<parallel>, #tpu.dimension_semantics<arbitrary>, #tpu.dimension_semantics<arbitrary>], iteration_bounds = array<i64: 4, 2, 1>, scalar_prefetch = 0 : i64, scratch_operands = 0 : i64, tpu.core_type = #tpu.core_type<tc>, window_params = [{transform_indices = @transform_0, window_bounds = array<i64: 1, 1, 4, 128>}, {transform_indices = @transform_1, window_bounds = array<i64: 1, 1, 4, 128>}, {transform_indices = @transform_2, window_bounds = array<i64: 1, 1, 128>}, {transform_indices = @transform_3, window_bounds = array<i64: 1, 1, 128>}, {transform_indices = @transform_4, window_bounds = array<i64: 1, 1, 128>}]} {
    %c0_i32 = arith.constant 0 : i32
    %0 = arith.cmpi eq, %arg1, %c0_i32 : i32
    %c0_i32_0 = arith.constant 0 : i32
    %1 = arith.cmpi eq, %arg2, %c0_i32_0 : i32
    %2 = arith.andi %0, %1 : i1
    %3 = arith.extui %2 : i1 to i32
    %c0_i32_1 = arith.constant 0 : i32
    %4 = arith.cmpi ne, %3, %c0_i32_1 : i32
    scf.if %4 {
      %cst_29 = arith.constant 0.000000e+00 : f32
      %28 = vector.broadcast %cst_29 : f32 to vector<1x1x128xf32>
      %c0_30 = arith.constant 0 : index
      %c0_31 = arith.constant 0 : index
      %c0_32 = arith.constant 0 : index
      %29 = vector.load %arg5[%c0_30, %c0_31, %c0_32] : memref<1x1x128xf32, #tpu.memory_space<vmem>>, vector<1x1x128xf32>
      tpu.vector_store %arg5[%c0_30, %c0_31, %c0_32], %28 {strides = array<i32>} : memref<1x1x128xf32, #tpu.memory_space<vmem>>, vector<1x1x128xf32>,
      %cst_33 = arith.constant 0.000000e+00 : f32
      %30 = vector.broadcast %cst_33 : f32 to vector<1x1x128xf32>
      %c0_34 = arith.constant 0 : index
      %c0_35 = arith.constant 0 : index
      %c0_36 = arith.constant 0 : index
      %31 = vector.load %arg6[%c0_34, %c0_35, %c0_36] : memref<1x1x128xf32, #tpu.memory_space<vmem>>, vector<1x1x128xf32>
      tpu.vector_store %arg6[%c0_34, %c0_35, %c0_36], %30 {strides = array<i32>} : memref<1x1x128xf32, #tpu.memory_space<vmem>>, vector<1x1x128xf32>,
      %cst_37 = arith.constant 0.000000e+00 : f32
      %32 = vector.broadcast %cst_37 : f32 to vector<1x1x128xf32>
      %c0_38 = arith.constant 0 : index
      %c0_39 = arith.constant 0 : index
      %c0_40 = arith.constant 0 : index
      %33 = vector.load %arg7[%c0_38, %c0_39, %c0_40] : memref<1x1x128xf32, #tpu.memory_space<vmem>>, vector<1x1x128xf32>
      tpu.vector_store %arg7[%c0_38, %c0_39, %c0_40], %32 {strides = array<i32>} : memref<1x1x128xf32, #tpu.memory_space<vmem>>, vector<1x1x128xf32>,
    } else {
    }
    %c0 = arith.constant 0 : index
    %c0_2 = arith.constant 0 : index
    %c0_3 = arith.constant 0 : index
    %c0_4 = arith.constant 0 : index
    %5 = vector.load %arg3[%c0, %c0_2, %c0_3, %c0_4] : memref<1x1x4x128xf32, #tpu.memory_space<vmem>>, vector<1x1x4x128xf32>
    %6 = vector.shape_cast %5 : vector<1x1x4x128xf32> to vector<4x128xf32>
    %c0_5 = arith.constant 0 : index
    %c0_6 = arith.constant 0 : index
    %c0_7 = arith.constant 0 : index
    %c0_8 = arith.constant 0 : index
    %7 = vector.load %arg4[%c0_5, %c0_6, %c0_7, %c0_8] : memref<1x1x4x128xf32, #tpu.memory_space<vmem>>, vector<1x1x4x128xf32>
    %8 = vector.shape_cast %7 : vector<1x1x4x128xf32> to vector<4x128xf32>
    %c0_9 = arith.constant 0 : index
    %c0_10 = arith.constant 0 : index
    %c0_11 = arith.constant 0 : index
    %9 = vector.load %arg5[%c0_9, %c0_10, %c0_11] : memref<1x1x128xf32, #tpu.memory_space<vmem>>, vector<1x1x128xf32>
    %10 = arith.mulf %6, %8 : vector<4x128xf32>
    %cst = arith.constant dense<0.000000e+00> : vector<128xf32>
    %11 = vector.multi_reduction <add>, %10, %cst [0] : vector<4x128xf32> to vector<128xf32>
    %12 = vector.shape_cast %11 : vector<128xf32> to vector<1x128xf32>
    %13 = vector.shape_cast %12 : vector<1x128xf32> to vector<1x1x128xf32>
    %14 = arith.addf %9, %13 : vector<1x1x128xf32>
    %c0_12 = arith.constant 0 : index
    %c0_13 = arith.constant 0 : index
    %c0_14 = arith.constant 0 : index
    %15 = vector.load %arg5[%c0_12, %c0_13, %c0_14] : memref<1x1x128xf32, #tpu.memory_space<vmem>>, vector<1x1x128xf32>
    tpu.vector_store %arg5[%c0_12, %c0_13, %c0_14], %14 {strides = array<i32>} : memref<1x1x128xf32, #tpu.memory_space<vmem>>, vector<1x1x128xf32>,
    %c0_15 = arith.constant 0 : index
    %c0_16 = arith.constant 0 : index
    %c0_17 = arith.constant 0 : index
    %16 = vector.load %arg6[%c0_15, %c0_16, %c0_17] : memref<1x1x128xf32, #tpu.memory_space<vmem>>, vector<1x1x128xf32>
    %cst_18 = arith.constant dense<0.000000e+00> : vector<128xf32>
    %17 = vector.multi_reduction <add>, %8, %cst_18 [0] : vector<4x128xf32> to vector<128xf32>
    %18 = vector.shape_cast %17 : vector<128xf32> to vector<1x128xf32>
    %19 = vector.shape_cast %18 : vector<1x128xf32> to vector<1x1x128xf32>
    %20 = arith.addf %16, %19 : vector<1x1x128xf32>
    %c0_19 = arith.constant 0 : index
    %c0_20 = arith.constant 0 : index
    %c0_21 = arith.constant 0 : index
    %21 = vector.load %arg6[%c0_19, %c0_20, %c0_21] : memref<1x1x128xf32, #tpu.memory_space<vmem>>, vector<1x1x128xf32>
    tpu.vector_store %arg6[%c0_19, %c0_20, %c0_21], %20 {strides = array<i32>} : memref<1x1x128xf32, #tpu.memory_space<vmem>>, vector<1x1x128xf32>,
    %c0_22 = arith.constant 0 : index
    %c0_23 = arith.constant 0 : index
    %c0_24 = arith.constant 0 : index
    %22 = vector.load %arg7[%c0_22, %c0_23, %c0_24] : memref<1x1x128xf32, #tpu.memory_space<vmem>>, vector<1x1x128xf32>
    %cst_25 = arith.constant dense<0.000000e+00> : vector<128xf32>
    %23 = vector.multi_reduction <add>, %6, %cst_25 [0] : vector<4x128xf32> to vector<128xf32>
    %24 = vector.shape_cast %23 : vector<128xf32> to vector<1x128xf32>
    %25 = vector.shape_cast %24 : vector<1x128xf32> to vector<1x1x128xf32>
    %26 = arith.addf %22, %25 : vector<1x1x128xf32>
    %c0_26 = arith.constant 0 : index
    %c0_27 = arith.constant 0 : index
    %c0_28 = arith.constant 0 : index
    %27 = vector.load %arg7[%c0_26, %c0_27, %c0_28] : memref<1x1x128xf32, #tpu.memory_space<vmem>>, vector<1x1x128xf32>
    tpu.vector_store %arg7[%c0_26, %c0_27, %c0_28], %26 {strides = array<i32>} : memref<1x1x128xf32, #tpu.memory_space<vmem>>, vector<1x1x128xf32>,
    return
  }
  func.func @transform_0(%arg0: i32, %arg1: i32, %arg2: i32) -> (i32, i32, i32, i32) {
    %c0_i32 = arith.constant 0 : i32
    %c0_i32_0 = arith.constant 0 : i32
    return %arg1, %arg0, %arg2, %c0_i32 : i32, i32, i32, i32
  }
  func.func @transform_1(%arg0: i32, %arg1: i32, %arg2: i32) -> (i32, i32, i32, i32) {
    %c0_i32 = arith.constant 0 : i32
    %c0_i32_0 = arith.constant 0 : i32
    return %arg1, %arg0, %arg2, %c0_i32 : i32, i32, i32, i32
  }
  func.func @transform_2(%arg0: i32, %arg1: i32, %arg2: i32) -> (i32, i32, i32) {
    %c0_i32 = arith.constant 0 : i32
    %c0_i32_0 = arith.constant 0 : i32
    %c0_i32_1 = arith.constant 0 : i32
    return %arg0, %c0_i32, %c0_i32_0 : i32, i32, i32
  }
  func.func @transform_3(%arg0: i32, %arg1: i32, %arg2: i32) -> (i32, i32, i32) {
    %c0_i32 = arith.constant 0 : i32
    %c0_i32_0 = arith.constant 0 : i32
    %c0_i32_1 = arith.constant 0 : i32
    return %arg0, %c0_i32, %c0_i32_0 : i32, i32, i32
  }
  func.func @transform_4(%arg0: i32, %arg1: i32, %arg2: i32) -> (i32, i32, i32) {
    %c0_i32 = arith.constant 0 : i32
    %c0_i32_0 = arith.constant 0 : i32
    %c0_i32_1 = arith.constant 0 : i32
    return %arg0, %c0_i32, %c0_i32_0 : i32, i32, i32
  }
}

</mosaic_0001>

<bundles_post_ra>
// kernel: tpu_custom_call.1
= control target key start
LH: loop header
LB: loop body
LE: loop exit
PB: predicated region body
PF: predicated region fallthrough
CT: control target
= control target key end

     0   :  { %s1329_s0 = inlined_call_operand.hbm [shape: f32[2,4,4,128], index: 0, kind: input, shape index: {}]   ;;  %s1330_s1 = inlined_call_operand.hbm [shape: f32[2,4,4,128], index: 1, kind: input, shape index: {}]   ;;  %s1331_s2 = inlined_call_operand.hbm [shape: f32[4,1,128], index: 2, kind: output, shape index: {0}]   ;;  %s1332_s3 = inlined_call_operand.hbm [shape: f32[4,1,128], index: 3, kind: output, shape index: {1}]   ;;  %s1333_s4 = inlined_call_operand.hbm [shape: f32[4,1,128], index: 4, kind: output, shape index: {2}]  }
   0x1   :  { %1343 = sst [smem:[#allocation20_spill]] %s1329_s0 }
   0x2   :  { %10 = vsyncpa [#allocation3], 0 }
   0x3   :  { %12 = vsyncpa [#allocation3 + $0x1], 0 }
   0x4   :  { %13 = vsyncpa [#allocation6], 0 }
   0x5   :  { %15 = vsyncpa [#allocation6 + $0x1], 0 }
   0x6   :  { %16 = vsyncpa [#allocation4], 0 }
   0x7   :  { %18 = vsyncpa [#allocation4 + $0x1], 0 }
   0x8   :  { %19 = vsyncpa [#allocation9], 0 }
   0x9   :  { %21 = vsyncpa [#allocation9 + $0x1], 0  ;;  %s967_s15 = smov 0   ;;  %s969_s16 = smov 0  }
   0xa   :  { %s971_s17 = smov 0   ;;  %s973_s18 = smov 0  }
   0xb   :  { %s975_s19 = smov 0   ;;  %s977_s20 = smov 0  }
   0xc   :  { %s979_s21 = smov 0   ;;  %s981_s22 = smov 0  }
   0xd   :  { %s983_s23 = smov 0   ;;  %s985_s24 = smov 0  }
   0xe   :  { %s987_s25 = smov 0  }
   0xf LB: > { %1344 = sst [smem:[#allocation15_spill]] %s926_s23  ;;  %s1021_s26 = sadd.s32 4294967295, %s934_s25   ;;  %s934_s25 = sphi %s987_s25, %s27_s25   ;;  %s930_s24 = sphi %s985_s24, %s1369_s24   ;;  %s926_s23 = sphi %s983_s23, %s1368_s23   ;;  %s922_s22 = sphi %s981_s22, %s1367_s22   ;;  %s918_s21 = sphi %s979_s21, %s1366_s21   ;;  %s914_s20 = sphi %s977_s20, %s1375_s20   ;;  %s910_s19 = sphi %s975_s19, %s1374_s19   ;;  %s906_s18 = sphi %s973_s18, %s1373_s18   ;;  %s902_s17 = sphi %s971_s17, %s1372_s17   ;;  %s898_s16 = sphi %s969_s16, %s1371_s16   ;;  %s894_s15 = sphi %s967_s15, %s1370_s15  }
  0x10   : > { %1345 = sst [smem:[#allocation16_spill]] %s930_s24  ;;  %s1334_s27 = sadd.s32 4294967294, %s934_s25  }
  0x11   : > { %s42_s28 = sadd.s32 1, %s926_s23  ;;  %s46_s29 = sadd.s32 1, %s930_s24 }
  0x12   : > { %p44_p0 = scmp.ge.s32.totalorder %s42_s28, 2  ;;  %s57_s30 = sadd.s32 1, %s914_s20 }
  0x13   : > { %p64_p1 = scmp.ne.s32.totalorder %s914_s20, %s910_s19  ;;  %p65_p2 = scmp.eq.s32.totalorder %s934_s25, 0 }
  0x14   : > { %s1377_s28 = smov (%p44_p0, %s42_s28), 0  ;;  %s1379_s29 = smov (!%p44_p0, %s46_s29), %s930_s24 }
  0x15   : > { %1346 = sst [smem:[#allocation17_spill]] %s1377_s28  ;;  %s50_s5 = ssub.s32 %s926_s23, %s1377_s28 }
  0x16   : > { %p1035_p3 = por %p65_p2, %p64_p1  ;;  %p48_p4 = scmp.ge.s32.totalorder %s1379_s29, 4 }
  0x17   : > { %p70_p5 = scmp.ne.s32.totalorder %s910_s19, %s906_s18  ;;  %p71_p6 = scmp.eq.s32.totalorder %s1021_s26, 0 }
  0x18   : > { %s113_s7 = sadd.s32 1, %s902_s17  ;;  %s1381_s29 = smov (%p48_p4, %s1379_s29), 0 }
  0x19   : > { %1348 = sst [smem:[#allocation18_spill]] %s1381_s29  ;;  %p1044_p7 = por %p71_p6, %p70_p5 }
  0x1a   : > { %p123_p8 = scmp.ne.s32.totalorder %s902_s17, %s898_s16  ;;  %s51_s9 = ssub.s32 %s930_s24, %s1381_s29 }
  0x1b   : > { %s1349_s8 = scalar_select %p1044_p7, 1, 0 }
  0x1c   : > { %p124_p9 = scmp.eq.s32.totalorder %s1021_s26, 7  ;;  %s52_s10 = sor.u32 %s51_s9, %s50_s5 }
  0x1d   : > { %p111_p10 = scmp.eq.s32.totalorder %s51_s9, 0  ;;  %p55_p11 = scmp.eq.s32.totalorder %s52_s10, 0 }
  0x1e   : > { %p1053_p12 = por %p124_p9, %p123_p8  ;;  %p129_p13 = scmp.ne.s32.totalorder %s898_s16, %s894_s15 }
  0x1f   : > { %s1058_s12 = scalar_select %p111_p10, %s902_s17, %s113_s7  }
  0x20   : > { %s1350_s11 = scalar_select %p1053_p12, 1, 0 }
  0x21   : > { %s1061_s13 = scalar_select %p55_p11, %s914_s20, %s57_s30  }
  0x22   : > { %p130_p0 = scmp.eq.s32.totalorder %s1334_s27, 7  ;;  %p597_p1 = scmp.lt.s32.totalorder %s934_s25, 8 }
  0x23   : > { %1351 = sst [smem:[#allocation19_spill]] %s1061_s13  ;;  %s1073_s18 = sand.u32 1, %s914_s20  }
  0x24   : > { %p1068_p2 = por %p130_p0, %p129_p13  ;;  %s1337_s5 = sshll.u32 %s1073_s18, 2 }
  0x25   : > { %s555_s7 = sshll.u32 %s926_s23, 2  ;;  %s206_s30 = scalar_lea.vmem [#allocation2], %s1337_s5 }
  0x26   : > { %s1352_s14 = scalar_select %p1068_p2, 1, 0 }
  0x27   : > { %s1078_s9 = sadd.s32 %s930_s24, %s555_s7  ;;  %s216_s10 = sshll.u32 %s206_s30, 4  ;;  %s1083_s10 = int_to_ptr.vmem [resolvable:$true] %s216_s10 }
  0x28   : > { %s1338_s27 = sshll.u32 %s1078_s9, 6  ;;  %s1353_s0 = sld [smem:[#allocation20_spill]] }
  0x29   : > { %p1094_p4 = pnand %p597_p1, %p1035_p3  ;;  %s203_s30 = scalar_lea.sflag [#allocation3], %s1073_s18 }
  0x2b   : > { %p690_p9 = pneg %p1094_p4 }
  0x2e   : > { %s1090_s13 = scalar_lea.hbm %s1353_s0, %s1338_s27  ;;  %s693_s6 = scalar_lea.hbm %s1353_s0, 512 }
  0x2f   : > { %s688_s5 = scalar_lea.hbm %s1090_s13, 64  ;;  %p694_p3 = scmp.lt.u32.totalorder %s1090_s13, %s1353_s0 }
  0x30   : > { %p689_p8 = scmp.ne.s32.totalorder %s1090_s13, %s688_s5  ;;  %p695_p13 = scmp.lt.u32.totalorder %s693_s6, %s688_s5 }
  0x31   : > { %p697_p1 = scmp.lt.u32.totalorder %s688_s5, %s1090_s13 }
  0x32   : > { %p691_p10 = pnand %p690_p9, %p689_p8  ;;  %p696_p0 = por %p695_p13, %p694_p3 }
  0x34   : > { %p692_p11 = pneg %p691_p10  ;;  %p698_p5 = por %p697_p1, %p696_p0 }
  0x36   : > { %p699_p6 = pnand %p698_p5, %p692_p11 }
  0x38   : > { %702 = shalt.err (!%p699_p6)
}
  0x39   : > { %s703_s23 = scalar_lea.vmem %s1083_s10, 64  ;;  %s936_s28 = smov [#allocation2]  }
  0x3a   : > { %p704_p8 = scmp.ne.s32.totalorder %s1083_s10, %s703_s23  ;;  %s708_s29 = sshll.u32 %s936_s28, 4  ;;  %s709_s29 = int_to_ptr.vmem [resolvable:$false] %s708_s29 }
  0x3b   : > { %s710_s24 = scalar_lea.vmem %s709_s29, 128  ;;  %p711_p12 = scmp.lt.s32.totalorder %s1083_s10, %s709_s29 }
  0x3c   : > { %p706_p10 = pnand %p704_p8, %p690_p9  ;;  %p712_p3 = scmp.lt.s32.totalorder %s710_s24, %s703_s23 }
  0x3e   : > { %p707_p2 = pneg %p706_p10  ;;  %p713_p13 = por %p712_p3, %p711_p12 }
  0x40   : > { %p714_p0 = pnand %p713_p13, %p707_p2 }
  0x42   : > { %717 = shalt.err (!%p714_p0)
}
  0x43   : > { %583 = dma.hbm_to_vmem [thread:$0]  (!%p1094_p4), %s1090_s13, 64, %s1083_s10, %s203_s30  }
  0x44   : > { %p1355_p5 = scmp.lt.s32.totalorder %s934_s25, 9  ;;  %p1356_p6 = scmp.ge.s32.totalorder %s934_s25, 1 }
  0x45   : > { %s1358_s23 = sshll.u32 %s1078_s9, 6  ;;  %s1359_s29 = sshll.u32 %s1073_s18, 2 }
  0x46   : > { %p1130_p11 = pnand %p1356_p6, %p1355_p5  ;;  %s1139_s28 = scalar_lea.hbm %s1330_s1, %s1358_s23 }
  0x47   : > { %s227_s24 = scalar_lea.vmem [#allocation5], %s1359_s29  ;;  %s224_s13 = scalar_lea.sflag [#allocation6], %s1073_s18 }
  0x48   : > { %s1357_s27 = scalar_select %p1130_p11, 1, 0 }
  0x49   : > { %s237_s0 = sshll.u32 %s227_s24, 4  ;;  %s718_s10 = scalar_lea.hbm %s1139_s28, 64  ;;  %s238_s0 = int_to_ptr.vmem [resolvable:$true] %s237_s0 }
  0x4a   : > { %p719_p12 = scmp.ne.s32.totalorder %s1139_s28, %s718_s10  ;;  %s723_s23 = scalar_lea.hbm %s1330_s1, 512 }
  0x4b   : > { %p724_p8 = scmp.lt.u32.totalorder %s1139_s28, %s1330_s1  ;;  %p725_p10 = scmp.lt.u32.totalorder %s723_s23, %s718_s10 }
  0x4c   : > { %p721_p2 = pnand %p719_p12, %p690_p9  ;;  %p727_p13 = scmp.lt.u32.totalorder %s718_s10, %s1139_s28 }
  0x4d   : > { %p726_p3 = por %p725_p10, %p724_p8 }
  0x4e   : > { %p722_p1 = pneg %p721_p2 }
  0x4f   : > { %p728_p0 = por %p727_p13, %p726_p3 }
  0x51   : > { %p729_p5 = pnand %p728_p0, %p722_p1 }
  0x53   : > { %732 = shalt.err (!%p729_p5)
}
  0x54   : > { %s733_s18 = scalar_lea.vmem %s238_s0, 64  ;;  %s937_s29 = smov [#allocation5]  }
  0x55   : > { %p734_p6 = scmp.ne.s32.totalorder %s238_s0, %s733_s18  ;;  %s738_s24 = sshll.u32 %s937_s29, 4  ;;  %s739_s24 = int_to_ptr.vmem [resolvable:$false] %s738_s24 }
  0x56   : > { %s740_s9 = scalar_lea.vmem %s739_s24, 128  ;;  %p741_p7 = scmp.lt.s32.totalorder %s238_s0, %s739_s24 }
  0x57   : > { %p736_p12 = pnand %p734_p6, %p690_p9  ;;  %p742_p11 = scmp.lt.s32.totalorder %s740_s9, %s733_s18 }
  0x59   : > { %p737_p2 = pneg %p736_p12  ;;  %p743_p8 = por %p742_p11, %p741_p7 }
  0x5b   : > { %p744_p10 = pnand %p743_p8, %p737_p2 }
  0x5d   : > { %747 = shalt.err (!%p744_p10)
}
  0x5e   : > { %586 = dma.hbm_to_vmem [thread:$0]  (!%p1094_p4), %s1139_s28, 64, %s238_s0, %s224_s13  }
  0x5f   : > { %p1360_p1 = scmp.ne.s32.totalorder %s1357_s27, 0 }
  0x60   : > { %s248_s10 = sand.u32 (!%p1360_p1), 1, %s910_s19   ;;  %p1361_p9 = scmp.ne.s32.totalorder (!%p1360_p1), %s1349_s8, 0 }
  0x61   : > { %246 = sbr.rel (%p1360_p1) target bundleno = 197 (0xc5), region = 28  ;;  %s561_s30 = sshll.u32 (!%p1360_p1), %s248_s10, 2 }
  0x62   : > { %s249_s23 = scalar_lea.sflag (!%p1360_p1), [#allocation3], %s248_s10  ;;  %s252_s5 = scalar_lea.vmem (!%p1360_p1), [#allocation2], %s561_s30 }
  0x68   : > { %877 = dma.done.wait (%p1361_p9), %s249_s23, 64  }
  0x69   : > { %879 = vsyncadd (%p1361_p9), %s249_s23, 4294967232  ;;  %s258_s6 = scalar_lea.sflag [#allocation6], %s248_s10  ;;  %s261_s18 = scalar_lea.vmem [#allocation5], %s561_s30 }
  0x6a   : > { %881 = dma.done.wait (%p1361_p9), %s258_s6, 64  }
  0x6b   : > { %883 = vsyncadd (%p1361_p9), %s258_s6, 4294967232  ;;  %s1175_s0 = sand.u32 1, %s898_s16   ;;  %p298_p7 = scmp.eq.s32.totalorder %s918_s21, 0 }
  0x6c   : > { %s1179_s7 = scalar_lea.vmem [#allocation7], %s1175_s0  ;;  %s1182_s27 = scalar_lea.vmem [#allocation8], %s1175_s0  ;;  %v938_v0 = vmov (%p298_p7), 0.0  }
  0x6d   : > { %s1185_s28 = scalar_lea.vmem [#allocation10], %s1175_s0  ;;  %303 = sbr.rel (!%p298_p7) target bundleno = 116 (0x74), region = 40  ;;  %304 = vst [vmem:[%s1179_s7] sm:$0x1] (%p298_p7), %v938_v0  ;;  %305 = vst [vmem:[%s1182_s27] sm:$0x1] (%p298_p7), %v938_v0 }
  0x6e   : > { %306 = vst [vmem:[%s1185_s28] sm:$0x1] (%p298_p7), %v938_v0 }
  0x74 PF: > { %v308_v1 = vld [vmem:[%s261_s18] sm:$0xf]  ;;  %vm311_vm0 = vcmask 1043456   ;;  %v307_v3 = vld [vmem:[%s252_s5] sm:$0xf]  ;;  %s345_s21 = sand.u32 1, %s1021_s26  }
  0x75   : > { %v322_v2 = vsel %vm311_vm0, %v308_v1, 0.0  ;;  %v310_v5 = vmul.f32 %v308_v1, %v307_v3  ;;  %v332_v6 = vsel %vm311_vm0, %v307_v3, 0.0  ;;  %s564_s8 = sshll.u32 %s922_s22, 4  ;;  %v321_v19 = vld [vmem:[%s1182_s27] sm:$0x1]  ;;  %s375_s13 = sshll.u32 %s1182_s27, 4  ;;  %s1203_s13 = int_to_ptr.vmem [resolvable:$true] %s375_s13 }
  0x76   : > { %v323_v4 = vrot.slane %v322_v2, 4  ;;  %v333_v7 = vrot.slane %v332_v6, 4  ;;  %v331_v23 = vld [vmem:[%s1185_s28] sm:$0x1]  ;;  %s388_s29 = sshll.u32 %s1185_s28, 4  ;;  %s1199_s10 = scalar_lea.hbm %s1332_s3, %s564_s8  ;;  %s1210_s29 = int_to_ptr.vmem [resolvable:$true] %s388_s29 }
  0x77   : > { %v312_v9 = vsel %vm311_vm0, %v310_v5, 0.0  ;;  %s362_s30 = sshll.u32 %s1179_s7, 4  ;;  %v309_v27 = vld [vmem:[%s1179_s7] sm:$0x1]  ;;  %s1208_s23 = scalar_lea.hbm %s1333_s4, %s564_s8  ;;  %s1218_s30 = int_to_ptr.vmem [resolvable:$true] %s362_s30 }
  0x78   : > { %v324_v8 = vadd.f32 %v323_v4, %v322_v2  ;;  %v313_v10 = vrot.slane %v312_v9, 4  ;;  %v334_v11 = vadd.f32 %v333_v7, %v332_v6  ;;  %s1216_s18 = scalar_lea.hbm %s1331_s2, %s564_s8  ;;  %s1221_s24 = scalar_lea.sflag [#allocation9], %s345_s21 }
  0x79   : > { %s748_s9 = scalar_lea.vmem %s1203_s13, 16  ;;  %p1362_p11 = scmp.ne.s32.totalorder %s1350_s11, 0 }
  0x7a   : > { %v325_v12 = vrot.slane %v324_v8, 2  ;;  %v314_v13 = vadd.f32 %v313_v10, %v312_v9  ;;  %v335_v14 = vrot.slane %v334_v11, 2  ;;  %p749_p4 = scmp.ne.s32.totalorder %s1203_s13, %s748_s9  ;;  %s939_s22 = smov [#allocation8]  }
  0x7b   : > { %s752_s26 = sshll.u32 %s939_s22, 4  ;;  %s753_s26 = int_to_ptr.vmem [resolvable:$false] %s752_s26 }
  0x7c   : > { %v326_v15 = vadd.f32 %v325_v12, %v324_v8  ;;  %v315_v16 = vrot.slane %v314_v13, 2  ;;  %v336_v17 = vadd.f32 %v335_v14, %v334_v11  ;;  %p750_p3 = pnand %p749_p4, %p1362_p11  ;;  %p755_p0 = scmp.lt.s32.totalorder %s1203_s13, %s753_s26 }
  0x7e   : > { %v327_v18 = vrot.slane %v326_v15, 1  ;;  %v316_v20 = vadd.f32 %v315_v16, %v314_v13  ;;  %v337_v21 = vrot.slane %v336_v17, 1  ;;  %p751_p13 = pneg %p750_p3 }
  0x80   : > { %v328_v22 = vadd.f32 %v327_v18, %v326_v15  ;;  %v317_v24 = vrot.slane %v316_v20, 1  ;;  %v338_v25 = vadd.f32 %v337_v21, %v336_v17 }
  0x82   : > { %v329_v26 = vadd.f32 %v328_v22, %v321_v19  ;;  %v318_v28 = vadd.f32 %v317_v24, %v316_v20  ;;  %v339_v29 = vadd.f32 %v338_v25, %v331_v23 }
  0x84   : > { %330 = vst [vmem:[%s1182_s27] sm:$0x1] %v329_v26  ;;  %v319_v30 = vadd.f32 %v318_v28, %v309_v27  ;;  %340 = vst [vmem:[%s1185_s28] sm:$0x1] %v339_v29  ;;  %s754_s27 = scalar_lea.vmem %s753_s26, 32 }
  0x85   : > { %p756_p5 = scmp.lt.s32.totalorder %s754_s27, %s748_s9 }
  0x87   : > { %p757_p6 = por %p756_p5, %p755_p0 }
  0x89   : > { %p758_p12 = pnand %p757_p6, %p751_p13 }
  0x8b   : > { %761 = shalt.err (!%p758_p12)
}
  0x8c   : > { %s762_s28 = scalar_lea.hbm %s1199_s10, 16  ;;  %s766_s5 = scalar_lea.hbm %s1332_s3, 64 }
  0x8d   : > { %p763_p2 = scmp.ne.s32.totalorder %s1199_s10, %s762_s28  ;;  %p767_p1 = scmp.lt.u32.totalorder %s1199_s10, %s1332_s3 }
  0x8e   : > { %p768_p9 = scmp.lt.u32.totalorder %s766_s5, %s762_s28  ;;  %p770_p4 = scmp.lt.u32.totalorder %s762_s28, %s1199_s10 }
  0x8f   : > { %p764_p8 = pnand %p763_p2, %p1362_p11 }
  0x90   : > { %p769_p7 = por %p768_p9, %p767_p1 }
  0x91   : > { %p765_p10 = pneg %p764_p8 }
  0x92   : > { %p771_p3 = por %p770_p4, %p769_p7 }
  0x94   : > { %p772_p13 = pnand %p771_p3, %p765_p10 }
  0x96   : > { %775 = shalt.err (!%p772_p13)
}
  0x97   : > { %575 = dma.vmem_to_hbm [thread:$0]  (%p1362_p11), %s1203_s13, 16, %s1199_s10, %s1221_s24  }
  0x98   : > { %s776_s9 = scalar_lea.vmem %s1210_s29, 16  ;;  %s940_s26 = smov [#allocation10]  }
  0x99   : > { %p777_p0 = scmp.ne.s32.totalorder %s1210_s29, %s776_s9  ;;  %s780_s27 = sshll.u32 %s940_s26, 4  ;;  %s781_s27 = int_to_ptr.vmem [resolvable:$false] %s780_s27 }
  0x9a   : > { %s782_s28 = scalar_lea.vmem %s781_s27, 32  ;;  %p783_p12 = scmp.lt.s32.totalorder %s1210_s29, %s781_s27 }
  0x9b   : > { %p778_p5 = pnand %p777_p0, %p1362_p11  ;;  %p784_p2 = scmp.lt.s32.totalorder %s782_s28, %s776_s9 }
  0x9d   : > { %p779_p6 = pneg %p778_p5  ;;  %p785_p8 = por %p784_p2, %p783_p12 }
  0x9f   : > { %p786_p10 = pnand %p785_p8, %p779_p6 }
  0xa1   : > { %789 = shalt.err (!%p786_p10)
}
  0xa2   : > { %s790_s13 = scalar_lea.hbm %s1208_s23, 16  ;;  %s794_s8 = scalar_lea.hbm %s1333_s4, 64 }
  0xa3   : > { %p791_p1 = scmp.ne.s32.totalorder %s1208_s23, %s790_s13  ;;  %p795_p4 = scmp.lt.u32.totalorder %s1208_s23, %s1333_s4 }
  0xa4   : > { %p796_p3 = scmp.lt.u32.totalorder %s794_s8, %s790_s13  ;;  %p798_p0 = scmp.lt.u32.totalorder %s790_s13, %s1208_s23 }
  0xa5   : > { %p792_p9 = pnand %p791_p1, %p1362_p11 }
  0xa6   : > { %p797_p13 = por %p796_p3, %p795_p4 }
  0xa7   : > { %p793_p7 = pneg %p792_p9 }
  0xa8   : > { %p799_p5 = por %p798_p0, %p797_p13 }
  0xaa   : > { %p800_p6 = pnand %p799_p5, %p793_p7 }
  0xac   : > { %803 = shalt.err (!%p800_p6)
}
  0xad   : > { %576 = dma.vmem_to_hbm [thread:$0]  (%p1362_p11), %s1210_s29, 16, %s1208_s23, %s1221_s24   ;;  %320 = vst [vmem:[%s1179_s7] sm:$0x1] %v319_v30 }
  0xae   : > { %s342_s22 = scalar_lea.sflag [#allocation4], %s1175_s0  ;;  %s804_s9 = scalar_lea.vmem %s1218_s30, 16 }
  0xaf   : > { %p805_p12 = scmp.ne.s32.totalorder %s1218_s30, %s804_s9  ;;  %s941_s26 = smov [#allocation7]  }
  0xb0   : > { %s808_s27 = sshll.u32 %s941_s26, 4  ;;  %s809_s27 = int_to_ptr.vmem [resolvable:$false] %s808_s27 }
  0xb1   : > { %p806_p2 = pnand %p805_p12, %p1362_p11  ;;  %s810_s28 = scalar_lea.vmem %s809_s27, 32 }
  0xb2   : > { %p811_p10 = scmp.lt.s32.totalorder %s1218_s30, %s809_s27  ;;  %p812_p1 = scmp.lt.s32.totalorder %s810_s28, %s804_s9 }
  0xb3   : > { %p807_p8 = pneg %p806_p2 }
  0xb4   : > { %p813_p9 = por %p812_p1, %p811_p10 }
  0xb6   : > { %p814_p7 = pnand %p813_p9, %p807_p8 }
  0xb8   : > { %817 = shalt.err (!%p814_p7)
}
  0xb9   : > { %s818_s0 = scalar_lea.hbm %s1216_s18, 16  ;;  %s822_s23 = scalar_lea.hbm %s1331_s2, 64 }
  0xba   : > { %p819_p4 = scmp.ne.s32.totalorder %s1216_s18, %s818_s0  ;;  %p823_p0 = scmp.lt.u32.totalorder %s1216_s18, %s1331_s2 }
  0xbb   : > { %p824_p5 = scmp.lt.u32.totalorder %s822_s23, %s818_s0  ;;  %p826_p12 = scmp.lt.u32.totalorder %s818_s0, %s1216_s18 }
  0xbc   : > { %p820_p3 = pnand %p819_p4, %p1362_p11 }
  0xbd   : > { %p825_p6 = por %p824_p5, %p823_p0 }
  0xbe   : > { %p821_p13 = pneg %p820_p3 }
  0xbf   : > { %p827_p2 = por %p826_p12, %p825_p6 }
  0xc1   : > { %p828_p8 = pnand %p827_p2, %p821_p13 }
  0xc3   : > { %831 = shalt.err (!%p828_p8)
}
  0xc4   : > { %574 = dma.vmem_to_hbm [thread:$0]  (%p1362_p11), %s1218_s30, 16, %s1216_s18, %s342_s22  }
  0xc5 PF: > { %p598_p10 = scmp.ge.s32.totalorder %s934_s25, 2  ;;  %s400_s10 = sand.u32 1, %s894_s15  }
  0xc6   : > { %p1363_p1 = scmp.ne.s32.totalorder %s1352_s14, 0  ;;  %s401_s21 = scalar_lea.sflag [#allocation4], %s400_s10 }
  0xc8   : > { %p588_p9 = pnand %p598_p10, %p1363_p1 }
  0xca   : > { %885 = dma.done.wait (!%p588_p9), %s401_s21, 16  }
  0xcb   : > { %887 = vsyncadd (!%p588_p9), %s401_s21, 4294967280  ;;  %s1364_s8 = sadd.s32 4294967294, %s934_s25  }
  0xcc   : > { %s408_s5 = sand.u32 1, %s1364_s8  }
  0xcd   : > { %s409_s6 = scalar_lea.sflag [#allocation9], %s408_s5 }
  0xce   : > { %889 = dma.done.wait (!%p588_p9), %s409_s6, 32  }
  0xcf   : > { %891 = vsyncadd (!%p588_p9), %s409_s6, 4294967264  ;;  %s27_s25 = sadd.s32 1, %s934_s25   ;;  %s1365_s11 = sld [smem:[#allocation19_spill]] }
  0xd0   : > { %p24_p11 = scmp.ge.s32.totalorder %s27_s25, 10   ;;  %s1366_s21 = sld [smem:[#allocation15_spill]] }
  0xd1   : > { %s1367_s22 = sld [smem:[#allocation16_spill]]  ;;  %s1368_s23 = sld [smem:[#allocation17_spill]] }
  0xd2   : > { %s1369_s24 = sld [smem:[#allocation18_spill]]  ;;  %s1370_s15 = smov %s898_s16 }
  0xd3   : > { %s1371_s16 = smov %s902_s17  ;;  %s1372_s17 = smov %s1058_s12 }
  0xd4   : > { %s1373_s18 = smov %s910_s19  ;;  %s1374_s19 = smov %s914_s20 }
  0xd5   : > { %s1375_s20 = smov %s1365_s11  ;;  %26 = sbr.rel (!%p24_p11) target bundleno = 15 (0xf), region = 122 }
  0xdc   :  { %421 = vsyncpa [#allocation3], 1 }
  0xdd   :  { %423 = vsyncpa [#allocation3 + $0x1], 1 }
  0xde   :  { %424 = vsyncpa [#allocation6], 1 }
  0xdf   :  { %426 = vsyncpa [#allocation6 + $0x1], 1 }
  0xe0   :  { %427 = vsyncpa [#allocation4], 1 }
  0xe1   :  { %429 = vsyncpa [#allocation4 + $0x1], 1 }
  0xe2   :  { %430 = vsyncpa [#allocation9], 1 }
  0xe3   :  { %432 = vsyncpa [#allocation9 + $0x1], 1 }

</bundles_post_ra>
